<compile_context>
chip_gen: v7x
topology: tpu7x:2x2x1
jax: 0.10.0
libtpu: 0.0.40
codegen_flags: <defaults>
</compile_context>

<pallas_src>
import numpy as np
import jax
import jax.numpy as jnp
from jax.experimental import pallas as pl
from jax.experimental.pallas import tpu as pltpu


HIDDEN = 256
LANE = 128
SUBLANE = 16          # bf16 sublane packing (16 rows / vreg) for x & out tiles


def _round_up(x, m):
    return (x + m - 1) // m * m


def dqn_kernel(x_ref, w1_ref, b1_ref, w2_ref, b2_ref, w3_ref, b3_ref, out_ref):
    # fc1: bf16 x bf16 on the MXU, f32 accumulation; bias + ReLU epilogue in f32
    h = jnp.dot(x_ref[...], w1_ref[...], preferred_element_type=jnp.float32)
    h = jnp.maximum(h + b1_ref[...], 0.0)
    # fc2 + ReLU
    h = jnp.dot(h.astype(jnp.bfloat16), w2_ref[...],
                preferred_element_type=jnp.float32)
    h = jnp.maximum(h + b2_ref[...], 0.0)
    # fc3 (no activation); output lanes padded to 128 -> unmasked, lane-dense vst
    o = jnp.dot(h.astype(jnp.bfloat16), w3_ref[...],
                preferred_element_type=jnp.float32)
    out_ref[...] = (o + b3_ref[...]).astype(out_ref.dtype)


def dqn_forward(x, params, *, batch_tile=1024):
    """x: (B, *input_shape); returns (B, action_space) f32 Q-values.

    batch_tile: rows per grid step (same default on v5e/v6e/v7x).  With D small
    a 1024-row bf16 tile is <1 MiB even double-buffered.  For very large replay
    batches on v7x, keeping num_tiles >= 2 lets both TensorCores work.
    """
    w1, b1, w2, b2, w3, b3 = params
    B = x.shape[0]
    A = w3.shape[1]
    D = int(np.prod(x.shape[1:]))

    # flatten like x.view(x.size(0), -1); bf16 operands for the MXU
    x2d = x.reshape(B, D).astype(jnp.bfloat16)

    # ---- alignment padding (zero-padded; sliced off after the call) ----
    A_pad = _round_up(max(A, LANE), LANE)          # output lanes -> multiple of 128
    B_pad = _round_up(max(B, SUBLANE), SUBLANE)    # rows -> multiple of 16 (bf16)
    if B_pad <= batch_tile:
        TB = B_pad                                 # single tile covers the batch
        num_tiles = 1
    else:
        # balanced tiles instead of rounding B up to a multiple of batch_tile
        num_tiles = pl.cdiv(B_pad, batch_tile)
        TB = _round_up(pl.cdiv(B_pad, num_tiles), SUBLANE)
        B_pad = num_tiles * TB

    # batch padding only; the contraction dim D is passed at its natural size
    x_p = jnp.zeros((B_pad, D), jnp.bfloat16).at[:B, :].set(x2d)
    w1_b = w1.astype(jnp.bfloat16)
    w2_b = w2.astype(jnp.bfloat16)
    w3_p = jnp.zeros((HIDDEN, A_pad), jnp.bfloat16).at[:, :A].set(
        w3.astype(jnp.bfloat16))
    b3_p = jnp.zeros((1, A_pad), jnp.float32).at[:, :A].set(b3)

    # ---- explicit, generation-aware VMEM budget ----
    weight_bytes = 2 * (2 * (D * HIDDEN + HIDDEN * HIDDEN + HIDDEN * A_pad)
                        + 4 * (2 * HIDDEN + A_pad))        # dbl-buffered residents
    tile_bytes = 2 * 2 * (TB * D + TB * A_pad)             # bf16 x/out, dbl-buffered
    scratch_bytes = 2 * TB * HIDDEN * 4                    # f32 intermediates
    needed = weight_bytes + tile_bytes + scratch_bytes
    try:
        info = pltpu.get_tpu_info()
        vmem_cap = getattr(info, "vmem_capacity_bytes", 64 << 20)
    except Exception:                                      # pragma: no cover
        vmem_cap = 64 << 20                                # v7x per-TC floor
    vmem_limit = int(min(max(2 * needed + (4 << 20), 32 << 20),
                         int(0.85 * vmem_cap), 100 << 20))

    # advisory cost hint for XLA's scheduler around the custom call
    flops = 2 * B_pad * (D * HIDDEN + HIDDEN * HIDDEN + HIDDEN * A_pad)
    bytes_accessed = (B_pad * D * 2 + B_pad * A_pad * 2
                      + 2 * (D * HIDDEN + HIDDEN * HIDDEN + HIDDEN * A_pad)
                      + 4 * (2 * HIDDEN + A_pad))
    cost = pl.CostEstimate(flops=int(flops), transcendentals=0,
                           bytes_accessed=int(bytes_accessed))

    out_p = pl.pallas_call(
        dqn_kernel,
        out_shape=jax.ShapeDtypeStruct((B_pad, A_pad), jnp.bfloat16),
        grid_spec=pltpu.PrefetchScalarGridSpec(
            num_scalar_prefetch=0,
            grid=(num_tiles,),
            in_specs=[
                pl.BlockSpec((TB, D), lambda i: (i, 0)),       # x tile marches over batch
                pl.BlockSpec((D, HIDDEN), lambda i: (0, 0)),   # weights stay VMEM-resident
                pl.BlockSpec((1, HIDDEN), lambda i: (0, 0)),
                pl.BlockSpec((HIDDEN, HIDDEN), lambda i: (0, 0)),
                pl.BlockSpec((1, HIDDEN), lambda i: (0, 0)),
                pl.BlockSpec((HIDDEN, A_pad), lambda i: (0, 0)),
                pl.BlockSpec((1, A_pad), lambda i: (0, 0)),
            ],
            out_specs=pl.BlockSpec((TB, A_pad), lambda i: (i, 0)),
        ),
        compiler_params=pltpu.CompilerParams(
            dimension_semantics=("parallel",),   # v7x: shard batch tiles over both TCs
            vmem_limit_bytes=vmem_limit,
        ),
        cost_estimate=cost,
    )(x_p, w1_b, b1, w2_b, b2, w3_p, b3_p)

    return out_p[:B, :A].astype(jnp.float32)


def init_dqn_params(key, input_shape, action_space):
    """Deterministic init mirroring nn.Linear's U(-1/sqrt(fan_in), 1/sqrt(fan_in))."""
    d_in = int(np.prod(input_shape))
    dims = [(d_in, HIDDEN), (HIDDEN, HIDDEN), (HIDDEN, action_space)]
    params = []
    for fan_in, fan_out in dims:
        key, kw, kb = jax.random.split(key, 3)
        bound = 1.0 / np.sqrt(fan_in)
        # stored as (in, out) = transpose of PyTorch's (out, in)
        w = jax.random.uniform(kw, (fan_in, fan_out), jnp.float32, -bound, bound)
        b = jax.random.uniform(kb, (1, fan_out), jnp.float32, -bound, bound)
        params += [w, b]
    return tuple(params)


def _jax_reference(x, params):
    w1, b1, w2, b2, w3, b3 = params
    xf = x.reshape(x.shape[0], -1)
    h = jnp.maximum(xf @ w1 + b1, 0.0)
    h = jnp.maximum(h @ w2 + b2, 0.0)
    return h @ w3 + b3


if __name__ == "__main__":
    key = jax.random.PRNGKey(0)
    k_params, k_x1, k_x2 = jax.random.split(key, 3)

    input_shape = (4, 4, 4)   # prod = 64 features after flatten
    action_space = 8
    params = init_dqn_params(k_params, input_shape, action_space)

    # bf16 operands (f32 accumulation) vs. f32 reference -> relaxed tolerances
    RTOL, ATOL = 5e-2, 5e-2

    # 1) tiny inference-style batch (single grid tile)
    batch = 2
    x = jax.random.normal(k_x1, (batch,) + input_shape, dtype=jnp.float32)
    q = dqn_forward(x, params)
    jax.block_until_ready(q)
    np.testing.assert_allclose(np.asarray(q), np.asarray(_jax_reference(x, params)),
                               rtol=RTOL, atol=ATOL)
    assert q.shape == (batch, action_space)

    # 2) replay-buffer-style batch exercising the batch-padding path
    batch_big = 300
    xb = jax.random.normal(k_x2, (batch_big,) + input_shape, dtype=jnp.float32)
    qb = dqn_forward(xb, params)
    jax.block_until_ready(qb)
    np.testing.assert_allclose(np.asarray(qb), np.asarray(_jax_reference(xb, params)),
                               rtol=RTOL, atol=ATOL)
    assert qb.shape == (batch_big, action_space)

    # 3) multi-tile grid path (balanced tiles, >1 grid step)
    batch_huge = 2500
    xh = jax.random.normal(k_x2, (batch_huge,) + input_shape, dtype=jnp.float32)
    qh = dqn_forward(xh, params, batch_tile=1024)
    jax.block_until_ready(qh)
    np.testing.assert_allclose(np.asarray(qh), np.asarray(_jax_reference(xh, params)),
                               rtol=RTOL, atol=ATOL)
    assert qh.shape == (batch_huge, action_space)

    print("KERNEL_OK")
</pallas_src>

<mosaic_0001>
module attributes {stable_mosaic.version = 11 : i64} {
  func.func @dqn_kernel(%arg0: i32, %arg1: memref<16x64xbf16, #tpu.memory_space<vmem>>, %arg2: memref<64x256xbf16, #tpu.memory_space<vmem>>, %arg3: memref<1x256xf32, #tpu.memory_space<vmem>>, %arg4: memref<256x256xbf16, #tpu.memory_space<vmem>>, %arg5: memref<1x256xf32, #tpu.memory_space<vmem>>, %arg6: memref<256x128xbf16, #tpu.memory_space<vmem>>, %arg7: memref<1x128xf32, #tpu.memory_space<vmem>>, %arg8: memref<16x128xbf16, #tpu.memory_space<vmem>>) attributes {dimension_semantics = [#tpu.dimension_semantics<parallel>], iteration_bounds = array<i64: 1>, scalar_prefetch = 0 : i64, scratch_operands = 0 : i64, tpu.core_type = #tpu.core_type<tc>, window_params = [{transform_indices = @transform_0, window_bounds = array<i64: 16, 64>}, {pipeline_mode = #tpu.pipeline_mode<synchronous>, transform_indices = @transform_1, window_bounds = array<i64: 64, 256>}, {pipeline_mode = #tpu.pipeline_mode<synchronous>, transform_indices = @transform_2, window_bounds = array<i64: 1, 256>}, {pipeline_mode = #tpu.pipeline_mode<synchronous>, transform_indices = @transform_3, window_bounds = array<i64: 256, 256>}, {pipeline_mode = #tpu.pipeline_mode<synchronous>, transform_indices = @transform_4, window_bounds = array<i64: 1, 256>}, {pipeline_mode = #tpu.pipeline_mode<synchronous>, transform_indices = @transform_5, window_bounds = array<i64: 256, 128>}, {pipeline_mode = #tpu.pipeline_mode<synchronous>, transform_indices = @transform_6, window_bounds = array<i64: 1, 128>}, {transform_indices = @transform_7, window_bounds = array<i64: 16, 128>}]} {
    %c0 = arith.constant 0 : index
    %c0_0 = arith.constant 0 : index
    %0 = vector.load %arg1[%c0, %c0_0] : memref<16x64xbf16, #tpu.memory_space<vmem>>, vector<16x64xbf16>
    %c0_1 = arith.constant 0 : index
    %c0_2 = arith.constant 0 : index
    %1 = vector.load %arg2[%c0_1, %c0_2] : memref<64x256xbf16, #tpu.memory_space<vmem>>, vector<64x256xbf16>
    %cst = arith.constant dense<0.000000e+00> : vector<16x256xf32>
    %2 = tpu.matmul %0, %1, %cst {dimension_numbers = #tpu.dot_dimension_numbers<[1], [0], [0], [1], [0, 0, 1, 1], [], []>} : vector<16x64xbf16>, vector<64x256xbf16>, vector<16x256xf32> -> vector<16x256xf32>
    %c0_3 = arith.constant 0 : index
    %c0_4 = arith.constant 0 : index
    %3 = vector.load %arg3[%c0_3, %c0_4] : memref<1x256xf32, #tpu.memory_space<vmem>>, vector<1x256xf32>
    %4 = vector.broadcast %3 : vector<1x256xf32> to vector<16x256xf32>
    %5 = arith.addf %2, %4 : vector<16x256xf32>
    %cst_5 = arith.constant 0.000000e+00 : f32
    %6 = vector.broadcast %cst_5 : f32 to vector<16x256xf32>
    %7 = arith.maximumf %5, %6 : vector<16x256xf32>
    %8 = arith.truncf %7 : vector<16x256xf32> to vector<16x256xbf16>
    %c0_6 = arith.constant 0 : index
    %c0_7 = arith.constant 0 : index
    %9 = vector.load %arg4[%c0_6, %c0_7] : memref<256x256xbf16, #tpu.memory_space<vmem>>, vector<256x256xbf16>
    %cst_8 = arith.constant dense<0.000000e+00> : vector<16x256xf32>
    %10 = tpu.matmul %8, %9, %cst_8 {dimension_numbers = #tpu.dot_dimension_numbers<[1], [0], [0], [1], [0, 0, 1, 1], [], []>} : vector<16x256xbf16>, vector<256x256xbf16>, vector<16x256xf32> -> vector<16x256xf32>
    %c0_9 = arith.constant 0 : index
    %c0_10 = arith.constant 0 : index
    %11 = vector.load %arg5[%c0_9, %c0_10] : memref<1x256xf32, #tpu.memory_space<vmem>>, vector<1x256xf32>
    %12 = vector.broadcast %11 : vector<1x256xf32> to vector<16x256xf32>
    %13 = arith.addf %10, %12 : vector<16x256xf32>
    %cst_11 = arith.constant 0.000000e+00 : f32
    %14 = vector.broadcast %cst_11 : f32 to vector<16x256xf32>
    %15 = arith.maximumf %13, %14 : vector<16x256xf32>
    %16 = arith.truncf %15 : vector<16x256xf32> to vector<16x256xbf16>
    %c0_12 = arith.constant 0 : index
    %c0_13 = arith.constant 0 : index
    %17 = vector.load %arg6[%c0_12, %c0_13] : memref<256x128xbf16, #tpu.memory_space<vmem>>, vector<256x128xbf16>
    %cst_14 = arith.constant dense<0.000000e+00> : vector<16x128xf32>
    %18 = tpu.matmul %16, %17, %cst_14 {dimension_numbers = #tpu.dot_dimension_numbers<[1], [0], [0], [1], [0, 0, 1, 1], [], []>} : vector<16x256xbf16>, vector<256x128xbf16>, vector<16x128xf32> -> vector<16x128xf32>
    %c0_15 = arith.constant 0 : index
    %c0_16 = arith.constant 0 : index
    %19 = vector.load %arg7[%c0_15, %c0_16] : memref<1x128xf32, #tpu.memory_space<vmem>>, vector<1x128xf32>
    %20 = vector.broadcast %19 : vector<1x128xf32> to vector<16x128xf32>
    %21 = arith.addf %18, %20 : vector<16x128xf32>
    %22 = arith.truncf %21 : vector<16x128xf32> to vector<16x128xbf16>
    %c0_17 = arith.constant 0 : index
    %c0_18 = arith.constant 0 : index
    %23 = vector.load %arg8[%c0_17, %c0_18] : memref<16x128xbf16, #tpu.memory_space<vmem>>, vector<16x128xbf16>
    tpu.vector_store %arg8[%c0_17, %c0_18], %22 {strides = array<i32>} : memref<16x128xbf16, #tpu.memory_space<vmem>>, vector<16x128xbf16>,
    return
  }
  func.func @transform_0(%arg0: i32) -> (i32, i32) {
    %c0_i32 = arith.constant 0 : i32
    %c0_i32_0 = arith.constant 0 : i32
    return %arg0, %c0_i32 : i32, i32
  }
  func.func @transform_1(%arg0: i32) -> (i32, i32) {
    %c0_i32 = arith.constant 0 : i32
    %c0_i32_0 = arith.constant 0 : i32
    %c0_i32_1 = arith.constant 0 : i32
    return %c0_i32, %c0_i32_0 : i32, i32
  }
  func.func @transform_2(%arg0: i32) -> (i32, i32) {
    %c0_i32 = arith.constant 0 : i32
    %c0_i32_0 = arith.constant 0 : i32
    %c0_i32_1 = arith.constant 0 : i32
    return %c0_i32, %c0_i32_0 : i32, i32
  }
  func.func @transform_3(%arg0: i32) -> (i32, i32) {
    %c0_i32 = arith.constant 0 : i32
    %c0_i32_0 = arith.constant 0 : i32
    %c0_i32_1 = arith.constant 0 : i32
    return %c0_i32, %c0_i32_0 : i32, i32
  }
  func.func @transform_4(%arg0: i32) -> (i32, i32) {
    %c0_i32 = arith.constant 0 : i32
    %c0_i32_0 = arith.constant 0 : i32
    %c0_i32_1 = arith.constant 0 : i32
    return %c0_i32, %c0_i32_0 : i32, i32
  }
  func.func @transform_5(%arg0: i32) -> (i32, i32) {
    %c0_i32 = arith.constant 0 : i32
    %c0_i32_0 = arith.constant 0 : i32
    %c0_i32_1 = arith.constant 0 : i32
    return %c0_i32, %c0_i32_0 : i32, i32
  }
  func.func @transform_6(%arg0: i32) -> (i32, i32) {
    %c0_i32 = arith.constant 0 : i32
    %c0_i32_0 = arith.constant 0 : i32
    %c0_i32_1 = arith.constant 0 : i32
    return %c0_i32, %c0_i32_0 : i32, i32
  }
  func.func @transform_7(%arg0: i32) -> (i32, i32) {
    %c0_i32 = arith.constant 0 : i32
    %c0_i32_0 = arith.constant 0 : i32
    return %arg0, %c0_i32 : i32, i32
  }
}

</mosaic_0001>

<bundles_post_ra>
// kernel: tpu_custom_call.1
= control target key start
LH: loop header
LB: loop body
LE: loop exit
PB: predicated region body
PF: predicated region fallthrough
CT: control target
= control target key end

     0   :  { %12 = vsyncpa [#allocation3], 0  ;;  %s1097_s0 = inlined_call_operand.hbm [shape: bf16[16,64], index: 0, kind: input, shape index: {}]   ;;  %s1098_s1 = inlined_call_operand.hbm [shape: bf16[64,256], index: 1, kind: input, shape index: {}]   ;;  %s1099_s2 = inlined_call_operand.vmem [shape: f32[1,256], index: 2, kind: input, shape index: {}]   ;;  %s1100_s3 = inlined_call_operand.hbm [shape: bf16[256,256], index: 3, kind: input, shape index: {}]   ;;  %s1101_s4 = inlined_call_operand.vmem [shape: f32[1,256], index: 4, kind: input, shape index: {}]   ;;  %s1102_s5 = inlined_call_operand.hbm [shape: bf16[256,128], index: 5, kind: input, shape index: {}]   ;;  %s1103_s6 = inlined_call_operand.vmem [shape: f32[1,128], index: 6, kind: input, shape index: {}]   ;;  %s1104_s7 = inlined_call_operand.hbm [shape: bf16[16,128], index: 7, kind: output, shape index: {}]  }
   0x1   :  { %13 = vsyncpa [#allocation6], 0 }
   0x2   :  { %14 = vsyncpa [#allocation9], 0 }
   0x3   :  { %15 = vsyncpa [#allocation4], 0  ;;  %s956_s24 = smov [#allocation5]   ;;  %s838_s28 = scalar_lea.hbm %s1098_s1, 1024 }
   0x4   :  { %s33_s25 = sshll.u32 %s956_s24, 4  ;;  %p839_p0 = scmp.ne.s32.totalorder %s1098_s1, %s838_s28  ;;  %s34_s25 = int_to_ptr.vmem [resolvable:$true] %s33_s25 }
   0x5   :  { %p842_p1 = scmp.lt.u32.totalorder %s838_s28, %s1098_s1 }
   0x7   :  { %p844_p2 = pnand %p842_p1, %p839_p0 }
   0x9   :  { %847 = shalt.err (!%p844_p2)
}
   0xa   :  { %s848_s10 = scalar_lea.vmem %s34_s25, 1024  ;;  %p853_p4 = scmp.lt.s32.totalorder %s34_s25, %s34_s25 }
   0xb   :  { %p849_p3 = scmp.ne.s32.totalorder %s34_s25, %s848_s10  ;;  %p854_p5 = scmp.lt.s32.totalorder %s848_s10, %s848_s10 }
   0xd   :  { %p855_p6 = por %p854_p5, %p853_p4 }
   0xf   :  { %p856_p7 = pnand %p855_p6, %p849_p3 }
  0x11   :  { %859 = shalt.err (!%p856_p7)
}
  0x12   :  { %s957_s11 = smov 128   ;;  %s958_s12 = smov 8  }
  0x13   :  { %39 = dma.hbm_to_vmem [thread:$0]  %s1098_s1, 1024, %s34_s25, [#allocation6], %s957_s11, %s957_s11, %s958_s12  }
  0x14   :  { %s959_s15 = smov [#allocation2]   ;;  %s860_s19 = scalar_lea.hbm %s1097_s0, 128 }
  0x15   :  { %s21_s16 = sshll.u32 %s959_s15, 4  ;;  %p861_p8 = scmp.ne.s32.totalorder %s1097_s0, %s860_s19  ;;  %s22_s16 = int_to_ptr.vmem [resolvable:$true] %s21_s16 }
  0x16   :  { %p864_p9 = scmp.lt.u32.totalorder %s860_s19, %s1097_s0 }
  0x18   :  { %p866_p10 = pnand %p864_p9, %p861_p8 }
  0x1a   :  { %869 = shalt.err (!%p866_p10)
}
  0x1b   :  { %s870_s24 = scalar_lea.vmem %s22_s16, 128  ;;  %p875_p12 = scmp.lt.s32.totalorder %s22_s16, %s22_s16 }
  0x1c   :  { %p871_p11 = scmp.ne.s32.totalorder %s22_s16, %s870_s24  ;;  %p876_p13 = scmp.lt.s32.totalorder %s870_s24, %s870_s24 }
  0x1e   :  { %p877_p0 = por %p876_p13, %p875_p12 }
  0x20   :  { %p878_p1 = pnand %p877_p0, %p871_p11 }
  0x22   :  { %881 = shalt.err (!%p878_p1)
}
  0x23   :  { %s960_s1 = smov 64   ;;  %s961_s25 = smov 4  }
  0x24   :  { %27 = dma.hbm_to_vmem [thread:$0]  %s1097_s0, 128, %s22_s16, [#allocation3], %s960_s1, %s960_s1, %s961_s25  }
  0x25   :  { %s962_s28 = smov [#allocation7]   ;;  %s963_s30 = smov [#allocation8]  }
  0x26   :  { %s47_s29 = sshll.u32 %s962_s28, 4  ;;  %s61_s8 = sshll.u32 %s963_s30, 4  ;;  %s48_s29 = int_to_ptr.vmem [resolvable:$true] %s47_s29  ;;  %s1036_s8 = int_to_ptr.vmem [resolvable:$true] %s61_s8 }
  0x27   :  { %s882_s13 = scalar_lea.hbm %s1100_s3, 4096 }
  0x28   :  { %p883_p2 = scmp.ne.s32.totalorder %s1100_s3, %s882_s13  ;;  %p886_p3 = scmp.lt.u32.totalorder %s882_s13, %s1100_s3 }
  0x2a   :  { %p888_p4 = pnand %p886_p3, %p883_p2 }
  0x2c   :  { %891 = shalt.err (!%p888_p4)
}
  0x2d   :  { %s892_s0 = scalar_lea.vmem %s48_s29, 4096  ;;  %p897_p6 = scmp.lt.s32.totalorder %s48_s29, %s48_s29 }
  0x2e   :  { %p893_p5 = scmp.ne.s32.totalorder %s48_s29, %s892_s0  ;;  %p898_p7 = scmp.lt.s32.totalorder %s892_s0, %s892_s0 }
  0x30   :  { %p899_p8 = por %p898_p7, %p897_p6 }
  0x32   :  { %p900_p9 = pnand %p899_p8, %p893_p5 }
  0x34   :  { %903 = shalt.err (!%p900_p9)
}
  0x35   :  { %53 = dma.hbm_to_vmem [thread:$0]  %s1100_s3, 4096, %s48_s29, [#allocation6], %s957_s11, %s957_s11, %s958_s12  }
  0x36   :  { %s904_s22 = scalar_lea.hbm %s1102_s5, 2048 }
  0x37   :  { %p905_p10 = scmp.ne.s32.totalorder %s1102_s5, %s904_s22  ;;  %p908_p11 = scmp.lt.u32.totalorder %s904_s22, %s1102_s5 }
  0x39   :  { %p910_p12 = pnand %p908_p11, %p905_p10 }
  0x3b   :  { %913 = shalt.err (!%p910_p12)
}
  0x3c   :  { %s914_s28 = scalar_lea.vmem %s1036_s8, 2048  ;;  %p919_p0 = scmp.lt.s32.totalorder %s1036_s8, %s1036_s8 }
  0x3d   :  { %p915_p13 = scmp.ne.s32.totalorder %s1036_s8, %s914_s28  ;;  %p920_p1 = scmp.lt.s32.totalorder %s914_s28, %s914_s28 }
  0x3f   :  { %p921_p2 = por %p920_p1, %p919_p0 }
  0x41   :  { %p922_p3 = pnand %p921_p2, %p915_p13 }
  0x43   :  { %925 = shalt.err (!%p922_p3)
}
  0x44   :  { %67 = dma.hbm_to_vmem [thread:$0]  %s1102_s5, 2048, %s1036_s8, [#allocation9], %s960_s1, %s960_s1, %s961_s25  }
  0x45   :  { %948 = dma.done.wait [#allocation3], 128  }
  0x46   :  { %949 = vsyncadd [#allocation3], 4294967168 }
  0x47   :  { %950 = dma.done.wait [#allocation6], 5120  }
  0x48   :  { %951 = vsyncadd [#allocation6], 4294962176 }
  0x49   :  { %952 = dma.done.wait [#allocation9], 2048  }
  0x4a   :  { %953 = vsyncadd [#allocation9], 4294965248  ;;  %v964_v0 = vmov 0   ;;  %v761_v1 = vld [vmem:[#allocation5 + $0x4] ss:$8 sps:$4 sm:$0xff]   ;;  %v773_v14 = vld [vmem:[#allocation2] sm:$0xff]   ;;  %v95_v53 = vlaneseq }
  0x4b   :  { %186 = vmatprep.mubr.bf16.mxu0 %v964_v0  ;;  %v763_v2 = vld [vmem:[#allocation5] ss:$8 sps:$4 sm:$0xff]   ;;  %154 = vmatprep.subr.bf16.mxu0 %v761_v1  ;;  %v764_v3 = vld [vmem:[#allocation5 + $0x14] ss:$8 sps:$4 sm:$0xff]   ;;  %v766_v4 = vld [vmem:[#allocation5 + $0x10] ss:$8 sps:$4 sm:$0xff]  }
  0x4c   :  { %155 = vmatpush1.bf16.msra.mxu0 %v763_v2  ;;  %v767_v5 = vld [vmem:[#allocation5 + $0x24] ss:$8 sps:$4 sm:$0xff]   ;;  %v769_v6 = vld [vmem:[#allocation5 + $0x20] ss:$8 sps:$4 sm:$0xff]   ;;  %v770_v9 = vld [vmem:[#allocation5 + $0x34] ss:$8 sps:$4 sm:$0xff]  }
  0x4d   :  { %156 = vmatprep.subr.bf16.mxu0 %v764_v3  ;;  %v774_v7 = vld [vmem:[#allocation7 + $0x4] ss:$8 sps:$4 sm:$0xff]   ;;  %v776_v8 = vld [vmem:[#allocation7] ss:$8 sps:$4 sm:$0xff]   ;;  %v777_v10 = vld [vmem:[#allocation7 + $0x14] ss:$8 sps:$4 sm:$0xff]  }
  0x4e   :  { %407 = vmatprep.subr.bf16.mxu1 %v774_v7  ;;  %v779_v11 = vld [vmem:[#allocation7 + $0x10] ss:$8 sps:$4 sm:$0xff]   ;;  %v780_v13 = vld [vmem:[#allocation7 + $0x24] ss:$8 sps:$4 sm:$0xff]   ;;  %v782_v15 = vld [vmem:[#allocation7 + $0x20] ss:$8 sps:$4 sm:$0xff]  }
  0x4f   :  { %408 = vmatpush1.bf16.msra.mxu1 %v776_v8  ;;  %v772_v12 = vld [vmem:[#allocation5 + $0x30] ss:$8 sps:$4 sm:$0xff]   ;;  %vm150_vm0 = vcmask 523264   ;;  %v783_v16 = vld [vmem:[#allocation7 + $0x34] ss:$8 sps:$4 sm:$0xff]   ;;  %v822_v42 = vld [vmem:[#allocation8 + $0x40] sm:$0xff]  }
  0x50   :  { %157 = vmatpush1.bf16.msra.mxu0 %v766_v4  ;;  %409 = vmatprep.subr.bf16.mxu1 %v777_v10  ;;  %v785_v17 = vld [vmem:[#allocation7 + $0x30] ss:$8 sps:$4 sm:$0xff]   ;;  %v786_v18 = vld [vmem:[#allocation7 + $0x44] ss:$8 sps:$4 sm:$0xff]   ;;  %v788_v19 = vld [vmem:[#allocation7 + $0x40] ss:$8 sps:$4 sm:$0xff]  }
  0x51   :  { %158 = vmatprep.subr.bf16.mxu0 %v767_v5  ;;  %v789_v20 = vld [vmem:[#allocation7 + $0x54] ss:$8 sps:$4 sm:$0xff]   ;;  %v791_v21 = vld [vmem:[#allocation7 + $0x50] ss:$8 sps:$4 sm:$0xff]   ;;  %v792_v22 = vld [vmem:[#allocation7 + $0x64] ss:$8 sps:$4 sm:$0xff]  }
  0x52   :  { %v794_v23 = vld [vmem:[#allocation7 + $0x60] ss:$8 sps:$4 sm:$0xff]   ;;  %v795_v24 = vld [vmem:[#allocation7 + $0x74] ss:$8 sps:$4 sm:$0xff]   ;;  %v797_v25 = vld [vmem:[#allocation7 + $0x70] ss:$8 sps:$4 sm:$0xff]  }
  0x53   :  { %410 = vmatpush1.bf16.msra.mxu1 %v779_v11  ;;  %v798_v26 = vld [vmem:[#allocation7 + $0x84] ss:$8 sps:$4 sm:$0xff]   ;;  %v800_v27 = vld [vmem:[#allocation7 + $0x80] ss:$8 sps:$4 sm:$0xff]   ;;  %v801_v28 = vld [vmem:[#allocation7 + $0x94] ss:$8 sps:$4 sm:$0xff]  }
  0x54   :  { %159 = vmatpush1.bf16.msra.mxu0 %v769_v6  ;;  %411 = vmatprep.subr.bf16.mxu1 %v780_v13  ;;  %v803_v29 = vld [vmem:[#allocation7 + $0x90] ss:$8 sps:$4 sm:$0xff]   ;;  %v804_v30 = vld [vmem:[#allocation7 + $0xa4] ss:$8 sps:$4 sm:$0xff]   ;;  %v806_v31 = vld [vmem:[#allocation7 + $0xa0] ss:$8 sps:$4 sm:$0xff]  }
  0x55   :  { %160 = vmatprep.subr.bf16.mxu0 %v770_v9  ;;  %v807_v32 = vld [vmem:[#allocation7 + $0xb4] ss:$8 sps:$4 sm:$0xff]   ;;  %v809_v33 = vld [vmem:[#allocation7 + $0xb0] ss:$8 sps:$4 sm:$0xff]   ;;  %v810_v34 = vld [vmem:[#allocation7 + $0xc4] ss:$8 sps:$4 sm:$0xff]  }
  0x56   :  { %v812_v35 = vld [vmem:[#allocation7 + $0xc0] ss:$8 sps:$4 sm:$0xff]   ;;  %v813_v36 = vld [vmem:[#allocation7 + $0xd4] ss:$8 sps:$4 sm:$0xff]   ;;  %v815_v37 = vld [vmem:[#allocation7 + $0xd0] ss:$8 sps:$4 sm:$0xff]  }
  0x57   :  { %412 = vmatpush1.bf16.msra.mxu1 %v782_v15  ;;  %v816_v38 = vld [vmem:[#allocation7 + $0xe4] ss:$8 sps:$4 sm:$0xff]   ;;  %v818_v39 = vld [vmem:[#allocation7 + $0xe0] ss:$8 sps:$4 sm:$0xff]   ;;  %v819_v40 = vld [vmem:[#allocation7 + $0xf4] ss:$8 sps:$4 sm:$0xff]  }
  0x58   :  { %161 = vmatpush1.bf16.msra.mxu0 %v772_v12  ;;  %413 = vmatprep.subr.bf16.mxu1 %v783_v16  ;;  %v821_v41 = vld [vmem:[#allocation7 + $0xf0] ss:$8 sps:$4 sm:$0xff]   ;;  %v823_v43 = vld [vmem:[#allocation8] sm:$0xff]   ;;  %v824_v44 = vld [vmem:[#allocation8 + $0x48] sm:$0xff]   ;;  %v96_v54 = vshrl.u32 %v95_v53, 7  ;;  %s965_s8 = smov [#allocation10]  }
  0x59   :  { %729 = vmatprep.subr.bf16.mxu0 %v822_v42  ;;  %v825_v45 = vld [vmem:[#allocation8 + $0x8] sm:$0xff]   ;;  %v826_v46 = vld [vmem:[#allocation8 + $0x50] sm:$0xff]   ;;  %v828_v48 = vld [vmem:[#allocation8 + $0x58] sm:$0xff]   ;;  %s647_s9 = sshll.u32 %s965_s8, 4  ;;  %s648_s9 = int_to_ptr.vmem [resolvable:$true] %s647_s9 }
  0x5a   :  { %v827_v47 = vld [vmem:[#allocation8 + $0x10] sm:$0xff]   ;;  %v829_v49 = vld [vmem:[#allocation8 + $0x18] sm:$0xff]   ;;  %v830_v50 = vld [vmem:[#allocation8 + $0x60] sm:$0xff]   ;;  %v97_v55 = vsub.s32 0, %v96_v54  ;;  %v101_v57 = vsub.s32 1, %v96_v54  ;;  %s926_s10 = scalar_lea.vmem %s648_s9, 128  ;;  %p931_p5 = scmp.lt.s32.totalorder %s648_s9, %s648_s9 }
  0x5b   :  { %670 = vmatmul.mubr.msk.bf16.vlgmr.msra.gmra.mrb[0].mxu0 %vm150_vm0, %v773_v14  ;;  %414 = vmatpush1.bf16.msra.mxu1 %v785_v17  ;;  %v831_v51 = vld [vmem:[#allocation8 + $0x20] sm:$0xff]   ;;  %v832_v52 = vld [vmem:[#allocation8 + $0x68] sm:$0xff]   ;;  %v93_v56 = vld [vmem:[%s1099_s2] sm:$0x3]  ;;  %p927_p4 = scmp.ne.s32.totalorder %s648_s9, %s926_s10  ;;  %p932_p6 = scmp.lt.s32.totalorder %s926_s10, %s926_s10 }
  0x5c   :  { %415 = vmatprep.subr.bf16.mxu1 %v786_v18  ;;  %730 = vmatpush3.bf16.msra.mxu0 %v823_v43  ;;  %v98_v58 = vrot.slane %v93_v56, %v97_v55  ;;  %v102_v59 = vrot.slane %v93_v56, %v101_v57  ;;  %v833_v10 = vld [vmem:[#allocation8 + $0x28] sm:$0xff]   ;;  %v834_v11 = vld [vmem:[#allocation8 + $0x70] sm:$0xff]   ;;  %v836_v13 = vld [vmem:[#allocation8 + $0x78] sm:$0xff]  }
  0x5d   :  { %731 = vmatprep.subr.bf16.mxu0 %v824_v44  ;;  %v835_v12 = vld [vmem:[#allocation8 + $0x30] sm:$0xff]   ;;  %v837_v14 = vld [vmem:[#allocation8 + $0x38] sm:$0xff]   ;;  %p933_p7 = por %p932_p6, %p931_p5 }
  0x5e   :  { %v235_v15 = vld [vmem:[%s1101_s4] sm:$0x3] }
  0x5f   :  { %416 = vmatpush1.bf16.msra.mxu1 %v788_v19  ;;  %v240_v16 = vrot.slane %v235_v15, %v97_v55  ;;  %v244_v17 = vrot.slane %v235_v15, %v101_v57  ;;  %p934_p8 = pnand %p933_p7, %p927_p4 }
  0x60   :  { %417 = vmatprep.subr.bf16.mxu1 %v789_v20  ;;  %732 = vmatpush3.bf16.msra.mxu0 %v825_v45 }
  0x61   :  { %733 = vmatprep.subr.bf16.mxu0 %v826_v46 }
  0x63   :  { %418 = vmatpush1.bf16.msra.mxu1 %v791_v21 }
  0x64   :  { %419 = vmatprep.subr.bf16.mxu1 %v792_v22  ;;  %734 = vmatpush3.bf16.msra.mxu0 %v827_v47 }
  0x65   :  { %735 = vmatprep.subr.bf16.mxu0 %v828_v48 }
  0x67   :  { %420 = vmatpush1.bf16.msra.mxu1 %v794_v23 }
  0x68   :  { %421 = vmatprep.subr.bf16.mxu1 %v795_v24  ;;  %736 = vmatpush3.bf16.msra.mxu0 %v829_v49 }
  0x69   :  { %737 = vmatprep.subr.bf16.mxu0 %v830_v50 }
  0x6b   :  { %422 = vmatpush1.bf16.msra.mxu1 %v797_v25 }
  0x6c   :  { %423 = vmatprep.subr.bf16.mxu1 %v798_v26  ;;  %738 = vmatpush3.bf16.msra.mxu0 %v831_v51 }
  0x6d   :  { %739 = vmatprep.subr.bf16.mxu0 %v832_v52 }
  0x6f   :  { %424 = vmatpush1.bf16.msra.mxu1 %v800_v27 }
  0x70   :  { %425 = vmatprep.subr.bf16.mxu1 %v801_v28  ;;  %740 = vmatpush3.bf16.msra.mxu0 %v833_v10 }
  0x71   :  { %741 = vmatprep.subr.bf16.mxu0 %v834_v11 }
  0x73   :  { %426 = vmatpush1.bf16.msra.mxu1 %v803_v29 }
  0x74   :  { %427 = vmatprep.subr.bf16.mxu1 %v804_v30  ;;  %742 = vmatpush3.bf16.msra.mxu0 %v835_v12 }
  0x75   :  { %743 = vmatprep.subr.bf16.mxu0 %v836_v13 }
  0x77   :  { %428 = vmatpush1.bf16.msra.mxu1 %v806_v31 }
  0x78   :  { %429 = vmatprep.subr.bf16.mxu1 %v807_v32  ;;  %744 = vmatpush3.bf16.msra.mxu0 %v837_v14 }
  0x7b   :  { %430 = vmatpush1.bf16.msra.mxu1 %v809_v33 }
  0x7c   :  { %431 = vmatprep.subr.bf16.mxu1 %v810_v34 }
  0x7f   :  { %432 = vmatpush1.bf16.msra.mxu1 %v812_v35 }
  0x80   :  { %433 = vmatprep.subr.bf16.mxu1 %v813_v36  ;;  %v703_v36 = vld [vmem:[%s1103_s6] ss:$0 sm:$0xff] }
  0x83   :  { %434 = vmatpush1.bf16.msra.mxu1 %v815_v37 }
  0x84   :  { %435 = vmatprep.subr.bf16.mxu1 %v816_v38 }
  0x87   :  { %436 = vmatpush1.bf16.msra.mxu1 %v818_v39 }
  0x88   :  { %437 = vmatprep.subr.bf16.mxu1 %v819_v40 }
  0x8b   :  { %438 = vmatpush1.bf16.msra.mxu1 %v821_v41 }
 0x12e   :  { %v188_v60 = vpop.f32.mrb[0].mxu0 }
 0x12f   :  { %v189_v61 = vadd.f32 %v188_v60, %v98_v58  ;;  %v190_v62 = vpop.f32.mrb[1].mxu0 }
 0x130   :  { %v191_v63 = vadd.f32 %v190_v62, %v102_v59  ;;  %v192_v0 = vpop.f32.mrb[2].mxu0 }
 0x131   :  { %v193_v1 = vadd.f32 %v192_v0, %v98_v58  ;;  %v194_v2 = vpop.f32.mrb[3].mxu0  ;;  %v197_v4 = vmax.f32 %v189_v61, 0.0 }
 0x132   :  { %v195_v3 = vadd.f32 %v194_v2, %v102_v59  ;;  %v198_v6 = vmax.f32 %v191_v63, 0.0 }
 0x133   :  { %v199_v5 = vmax.f32 %v193_v1, 0.0 }
 0x134   :  { %v200_v7 = vmax.f32 %v195_v3, 0.0 }
 0x135   :  { %v201_v8 = vpack.c.bf16 %v199_v5, %v197_v4 }
 0x136   :  { %v202_v9 = vpack.c.bf16 %v200_v7, %v198_v6 }
 0x138   :  { %439 = vmatprep.mubr.bf16.mxu1 %v202_v9 }
 0x139   :  { %440 = vmatmul.mubr.bf16.vlgmr.msra.gmra.mrb[0].mxu1 %v201_v8 }
 0x20c   :  { %v441_v18 = vpop.f32.mrb[0].mxu1 }
 0x20d   :  { %v442_v19 = vadd.f32 %v441_v18, %v240_v16  ;;  %v443_v20 = vpop.f32.mrb[1].mxu1 }
 0x20e   :  { %v444_v21 = vadd.f32 %v443_v20, %v244_v17  ;;  %v445_v22 = vpop.f32.mrb[2].mxu1 }
 0x20f   :  { %v446_v23 = vadd.f32 %v445_v22, %v240_v16  ;;  %v447_v24 = vpop.f32.mrb[3].mxu1  ;;  %v450_v26 = vmax.f32 %v442_v19, 0.0 }
 0x210   :  { %v448_v25 = vadd.f32 %v447_v24, %v244_v17  ;;  %v451_v28 = vmax.f32 %v444_v21, 0.0 }
 0x211   :  { %v452_v27 = vmax.f32 %v446_v23, 0.0 }
 0x212   :  { %v453_v29 = vmax.f32 %v448_v25, 0.0 }
 0x213   :  { %v454_v30 = vpack.c.bf16 %v452_v27, %v450_v26 }
 0x214   :  { %v455_v31 = vpack.c.bf16 %v453_v29, %v451_v28 }
 0x216   :  { %623 = vmatprep.mubr.bf16.mxu0 %v455_v31 }
 0x217   :  { %624 = vmatmul.mubr.bf16.vlgmr.msra.gmra.mrb[4].mxu0 %v454_v30 }
 0x2ea   :  { %v745_v32 = vpop.f32.mrb[4].mxu0 }
 0x2eb   :  { %v746_v33 = vpop.f32.mrb[5].mxu0 }
 0x2ec   :  { %v747_v34 = vadd.f32 %v746_v33, %v745_v32  ;;  %v748_v35 = vpop.f32.mrb[6].mxu0 }
 0x2ed   :  { %v749_v37 = vpop.f32.mrb[7].mxu0 }
 0x2ee   :  { %v750_v38 = vadd.f32 %v749_v37, %v748_v35  ;;  %v626_v39 = vadd.f32 %v747_v34, %v703_v36 }
 0x2f0   :  { %v629_v40 = vadd.f32 %v750_v38, %v703_v36 }
 0x2f2   :  { %v727_v41 = vpack.c.bf16 %v629_v40, %v626_v39 }
 0x2f4   :  { %728 = vst [vmem:[#allocation10] sm:$0xff] %v727_v41  }
 0x2f5   :  { %937 = shalt.err (!%p934_p8)
}
 0x2f6   :  { %s938_s6 = scalar_lea.hbm %s1104_s7, 128 }
 0x2f7   :  { %p939_p9 = scmp.ne.s32.totalorder %s1104_s7, %s938_s6  ;;  %p942_p10 = scmp.lt.u32.totalorder %s938_s6, %s1104_s7 }
 0x2f9   :  { %p944_p11 = pnand %p942_p10, %p939_p9 }
 0x2fb   :  { %947 = shalt.err (!%p944_p11)
}
 0x2fc   :  { %653 = dma.vmem_to_hbm [thread:$0]  %s648_s9, 128, %s1104_s7, [#allocation4], %s960_s1, %s960_s1, %s961_s25  }
 0x2fd   :  { %954 = dma.done.wait [#allocation4], 128  }
 0x2fe   :  { %955 = vsyncadd [#allocation4], 4294967168 }
 0x2ff   :  { %657 = vsyncpa [#allocation3], 1 }
 0x300   :  { %658 = vsyncpa [#allocation6], 1 }
 0x301   :  { %659 = vsyncpa [#allocation9], 1 }
 0x302   :  { %660 = vsyncpa [#allocation4], 1 }

</bundles_post_ra>
